<compile_context>
chip_gen: v7x
topology: tpu7x:2x2x1
jax: 0.10.0
libtpu: 0.0.40
codegen_flags: <defaults>
</compile_context>

<pallas_src>
import jax
import jax.numpy as jnp
from jax.experimental import pallas as pl
from jax.experimental.pallas import tpu as pltpu


def _cdiv(a, b):
    return -(-a // b)


def _normalize_kernel_rowwise(x_ref, sb_ref, o_ref):
    # x_ref: (block_rows, block_cols); sb_ref: (block_rows, 2) f32 packed [scale | bias].
    # out = x * (1/std) + (-mean/std)  ==  (x - mean) / std
    sb = sb_ref[...]
    scale = sb[:, 0:1]
    bias = sb[:, 1:2]
    o_ref[...] = (x_ref[...].astype(jnp.float32) * scale + bias).astype(o_ref.dtype)


def _normalize_kernel_colwise(x_ref, sb_ref, o_ref):
    # x_ref: (block_rows, cols); sb_ref: (2, cols) f32 packed [scale ; bias].
    sb = sb_ref[...]
    scale = sb[0:1, :]
    bias = sb[1:2, :]
    o_ref[...] = (x_ref[...].astype(jnp.float32) * scale + bias).astype(o_ref.dtype)


def normalize_by_channel_mean_std(x, mean, std, *, target_block_bytes=6 * 1024 * 1024):
    """x: (N, C, H, W). mean, std: (C,). Returns (x - mean[None,:,None,None]) / std[None,:,None,None]."""
    N, C, H, W = x.shape
    itemsize = jnp.dtype(x.dtype).itemsize
    # Sublane packing per dtype width: 8 rows (f32), 16 (bf16/f16), 32 (int8/fp8).
    packing = 8 * max(1, 4 // itemsize)

    # Per-channel fused multiply-add coefficients (tiny, plain JAX on the host side).
    scale = 1.0 / std.astype(jnp.float32)
    bias = -mean.astype(jnp.float32) * scale

    spatial = H * W
    lane_dense = spatial >= 128 and spatial % 128 == 0

    if lane_dense:
        # (N*C, H*W): full-width, unmasked lane-dense stores; per-row scale/bias.
        rows, cols = N * C, spatial
        x2 = x.reshape(rows, cols)
        sb = jnp.stack([jnp.tile(scale, N), jnp.tile(bias, N)], axis=1)  # (rows, 2)
        kernel = _normalize_kernel_rowwise
    else:
        # Small / non-128-multiple spatial maps: fold channels into the lane axis so the
        # output stays wide instead of masked (rows, <128) partial stores.
        rows, cols = N, C * spatial
        x2 = x.reshape(rows, cols)
        sb = jnp.stack([jnp.repeat(scale, spatial), jnp.repeat(bias, spatial)], axis=0)  # (2, cols)
        kernel = _normalize_kernel_colwise

    row_bytes = cols * itemsize

    # --- Tile selection: cap block bytes, not just block_rows -------------------------
    if lane_dense and packing * row_bytes > target_block_bytes:
        # Even a minimum-height full-width block is too big: tile the column axis too,
        # in multiples of 128 lanes.
        block_rows = packing if rows >= packing else rows
        col_block = (target_block_bytes // max(1, block_rows * itemsize)) // 128 * 128
        col_block = max(128, min(col_block, cols))
    else:
        col_block = cols
        block_rows = (target_block_bytes // max(1, row_bytes)) // packing * packing
        block_rows = max(packing, block_rows)
        block_rows = min(block_rows, rows)

    n_row_blocks = _cdiv(rows, block_rows)
    n_col_blocks = _cdiv(cols, col_block)

    # Guarantee pipeline / megacore depth: if the whole array fits in <4 blocks and the
    # row axis allows full packing-sized blocks, split rows into up to 4 blocks.
    if n_row_blocks * n_col_blocks < 4 and rows >= 2 * packing:
        desired = min(4, rows // packing)
        if desired > n_row_blocks * n_col_blocks:
            block_rows = _cdiv(_cdiv(rows, desired), packing) * packing
            block_rows = min(block_rows, rows)
            n_row_blocks = _cdiv(rows, block_rows)

    grid = (n_row_blocks, n_col_blocks)

    x_spec = pl.BlockSpec((block_rows, col_block), lambda i, j: (i, j))
    out_spec = pl.BlockSpec((block_rows, col_block), lambda i, j: (i, j))
    if lane_dense:
        sb_spec = pl.BlockSpec((block_rows, 2), lambda i, j: (i, 0))
    else:
        sb_spec = pl.BlockSpec((2, cols), lambda i, j: (0, 0))

    # VMEM budget: double-buffered in + out blocks + (lane/sublane padded) scale-bias slab,
    # plus slack for Mosaic internals. Keeps v7x (64 MiB physical) comfortable.
    x_pad_bytes = _cdiv(block_rows, packing) * packing * _cdiv(col_block, 128) * 128 * itemsize
    if lane_dense:
        sb_pad_bytes = _cdiv(block_rows, 8) * 8 * 128 * 4
    else:
        sb_pad_bytes = 8 * _cdiv(cols, 128) * 128 * 4
    vmem_need = 2 * (2 * x_pad_bytes + sb_pad_bytes) + 2 * 1024 * 1024
    vmem_limit = int(min(max(vmem_need, 8 * 1024 * 1024), 100 * 1024 * 1024))

    total_elems = rows * cols
    cost = pl.CostEstimate(
        flops=2 * total_elems,            # one mul + one add per element
        transcendentals=0,
        bytes_accessed=2 * total_elems * itemsize + int(sb.size) * 4,
    )

    # TODO(synk): expose input_output_aliases={0: 0} for callers that can donate x
    # (saves the output HBM allocation; not safe in this demo since x is reused below).
    out2 = pl.pallas_call(
        kernel,
        grid=grid,
        in_specs=[x_spec, sb_spec],
        out_specs=out_spec,
        out_shape=jax.ShapeDtypeStruct((rows, cols), x.dtype),
        compiler_params=pltpu.CompilerParams(
            dimension_semantics=("parallel", "parallel"),
            vmem_limit_bytes=vmem_limit,
        ),
        cost_estimate=cost,
    )(x2, sb)

    return out2.reshape(N, C, H, W)


if __name__ == "__main__":
    key = jax.random.PRNGKey(0)
    N, C, H, W = 2, 4, 16, 16
    kx, _ = jax.random.split(key)
    x = jax.random.normal(kx, (N, C, H, W), dtype=jnp.float32)

    # Deterministic "buffers" (shape (C,) each), matching the module's registered buffers.
    mean = jnp.array([0.485, 0.456, 0.406, 0.5], dtype=jnp.float32)
    std = jnp.array([0.229, 0.224, 0.225, 0.25], dtype=jnp.float32)

    out = normalize_by_channel_mean_std(x, mean, std)
    out = jax.block_until_ready(out)

    # Reference check in plain JAX (same semantics as normalize_fn).
    ref = (x - mean[None, :, None, None]) / std[None, :, None, None]
    assert out.shape == x.shape and out.dtype == x.dtype
    # scale/bias reformulation differs from sub-then-div by a few ULP.
    assert jnp.allclose(out, ref, atol=1e-5, rtol=1e-5)

    # Also exercise the small-spatial (non-128-multiple) fallback path: 7x7 feature map.
    x_small = jax.random.normal(kx, (2, 4, 7, 7), dtype=jnp.float32)
    out_small = jax.block_until_ready(normalize_by_channel_mean_std(x_small, mean, std))
    ref_small = (x_small - mean[None, :, None, None]) / std[None, :, None, None]
    assert jnp.allclose(out_small, ref_small, atol=1e-5, rtol=1e-5)

    print("KERNEL_OK")
</pallas_src>

<mosaic_0001>
module attributes {stable_mosaic.version = 11 : i64} {
  func.func @_normalize_kernel_rowwise(%arg0: i32, %arg1: i32, %arg2: memref<8x256xf32, #tpu.memory_space<vmem>>, %arg3: memref<8x2xf32, #tpu.memory_space<vmem>>, %arg4: memref<8x256xf32, #tpu.memory_space<vmem>>) attributes {dimension_semantics = [#tpu.dimension_semantics<parallel>, #tpu.dimension_semantics<parallel>], iteration_bounds = array<i64: 1, 1>, scalar_prefetch = 0 : i64, scratch_operands = 0 : i64, tpu.core_type = #tpu.core_type<tc>, window_params = [{transform_indices = @transform_0, window_bounds = array<i64: 8, 256>}, {transform_indices = @transform_1, window_bounds = array<i64: 8, 2>}, {transform_indices = @transform_2, window_bounds = array<i64: 8, 256>}]} {
    %c0 = arith.constant 0 : index
    %c0_0 = arith.constant 0 : index
    %0 = vector.load %arg3[%c0, %c0_0] : memref<8x2xf32, #tpu.memory_space<vmem>>, vector<8x2xf32>
    %1 = vector.extract_strided_slice %0 {offsets = [0, 0], sizes = [8, 1], strides = [1, 1]} : vector<8x2xf32> to vector<8x1xf32>
    %2 = vector.extract_strided_slice %0 {offsets = [0, 1], sizes = [8, 1], strides = [1, 1]} : vector<8x2xf32> to vector<8x1xf32>
    %c0_1 = arith.constant 0 : index
    %c0_2 = arith.constant 0 : index
    %3 = vector.load %arg2[%c0_1, %c0_2] : memref<8x256xf32, #tpu.memory_space<vmem>>, vector<8x256xf32>
    %4 = vector.broadcast %1 : vector<8x1xf32> to vector<8x256xf32>
    %5 = arith.mulf %3, %4 : vector<8x256xf32>
    %6 = vector.broadcast %2 : vector<8x1xf32> to vector<8x256xf32>
    %7 = arith.addf %5, %6 : vector<8x256xf32>
    %c0_3 = arith.constant 0 : index
    %c0_4 = arith.constant 0 : index
    %8 = vector.load %arg4[%c0_3, %c0_4] : memref<8x256xf32, #tpu.memory_space<vmem>>, vector<8x256xf32>
    tpu.vector_store %arg4[%c0_3, %c0_4], %7 {strides = array<i32>} : memref<8x256xf32, #tpu.memory_space<vmem>>, vector<8x256xf32>,
    return
  }
  func.func @transform_0(%arg0: i32, %arg1: i32) -> (i32, i32) {
    %c0_i32 = arith.constant 0 : i32
    return %arg0, %arg1 : i32, i32
  }
  func.func @transform_1(%arg0: i32, %arg1: i32) -> (i32, i32) {
    %c0_i32 = arith.constant 0 : i32
    %c0_i32_0 = arith.constant 0 : i32
    return %arg0, %c0_i32 : i32, i32
  }
  func.func @transform_2(%arg0: i32, %arg1: i32) -> (i32, i32) {
    %c0_i32 = arith.constant 0 : i32
    return %arg0, %arg1 : i32, i32
  }
}

</mosaic_0001>

<bundles_post_ra>
// kernel: tpu_custom_call.1
= control target key start
LH: loop header
LB: loop body
LE: loop exit
PB: predicated region body
PF: predicated region fallthrough
CT: control target
= control target key end

     0   :  { %7 = vsyncpa [#allocation3], 0  ;;  %s157_s0 = inlined_call_operand.hbm [shape: f32[8,256], index: 0, kind: input, shape index: {}]   ;;  %s158_s1 = inlined_call_operand.vmem [shape: f32[8,2], index: 1, kind: input, shape index: {}]   ;;  %s159_s2 = inlined_call_operand.hbm [shape: f32[8,256], index: 2, kind: output, shape index: {}]  }
   0x1   :  { %8 = vsyncpa [#allocation4], 0  ;;  %s111_s9 = smov [#allocation2]   ;;  %s63_s13 = scalar_lea.hbm %s157_s0, 256 }
   0x2   :  { %s15_s10 = sshll.u32 %s111_s9, 4  ;;  %p64_p0 = scmp.ne.s32.totalorder %s157_s0, %s63_s13  ;;  %s16_s10 = int_to_ptr.vmem [resolvable:$true] %s15_s10 }
   0x3   :  { %p67_p1 = scmp.lt.u32.totalorder %s63_s13, %s157_s0 }
   0x5   :  { %p69_p2 = pnand %p67_p1, %p64_p0 }
   0x7   :  { %72 = shalt.err (!%p69_p2)
}
   0x8   :  { %s73_s18 = scalar_lea.vmem %s16_s10, 256  ;;  %p78_p4 = scmp.lt.s32.totalorder %s16_s10, %s16_s10 }
   0x9   :  { %p74_p3 = scmp.ne.s32.totalorder %s16_s10, %s73_s18  ;;  %p79_p5 = scmp.lt.s32.totalorder %s73_s18, %s73_s18 }
   0xb   :  { %p80_p6 = por %p79_p5, %p78_p4 }
   0xd   :  { %p81_p7 = pnand %p80_p6, %p74_p3 }
   0xf   :  { %84 = shalt.err (!%p81_p7)
}
  0x10   :  { %18 = dma.hbm_to_vmem [thread:$0]  %s157_s0, 256, %s16_s10, [#allocation3]  }
  0x11   :  { %107 = dma.done.wait [#allocation3], 256  }
  0x12   :  { %108 = vsyncadd [#allocation3], 4294967040  ;;  %v112_v0 = vmov 0   ;;  %v24_v1 = vld [vmem:[%s158_s1] sm:$0xff]  ;;  %v113_v2 = vmov 1   ;;  %v26_v5 = vld [vmem:[#allocation2 + $0x8] sm:$0xff] }
  0x13   :  { %61 = vset.pattern.permute.xlu0 %v112_v0  ;;  %v25_v4 = vld [vmem:[#allocation2] sm:$0xff]  ;;  %s114_s23 = smov [#allocation5]  }
  0x14   :  { %29 = vperm.xlu0 %61, %v24_v1   ;;  %s48_s24 = sshll.u32 %s114_s23, 4  ;;  %s49_s24 = int_to_ptr.vmem [resolvable:$true] %s48_s24 }
  0x15   :  { %s85_s0 = scalar_lea.vmem %s49_s24, 256  ;;  %p90_p9 = scmp.lt.s32.totalorder %s49_s24, %s49_s24 }
  0x16   :  { %p86_p8 = scmp.ne.s32.totalorder %s49_s24, %s85_s0  ;;  %p91_p10 = scmp.lt.s32.totalorder %s85_s0, %s85_s0 }
  0x18   :  { %62 = vset.pattern.permute.xlu0 %v113_v2  ;;  %p92_p11 = por %p91_p10, %p90_p9 }
  0x19   :  { %35 = vperm.xlu0 %62, %v24_v1  }
  0x1a   :  { %p93_p12 = pnand %p92_p11, %p86_p8 }
  0x93   :  { %v30_v3 = vpop.permute.xlu0 %29 }
  0x94   :  { %v32_v6 = vmul.f32 %v30_v3, %v25_v4  ;;  %v33_v7 = vmul.f32 %v30_v3, %v26_v5 }
  0x98   :  { %v36_v8 = vpop.permute.xlu0 %35 }
  0x99   :  { %v38_v9 = vadd.f32 %v36_v8, %v32_v6  ;;  %v39_v10 = vadd.f32 %v36_v8, %v33_v7 }
  0x9b   :  { %40 = vst [vmem:[#allocation5] sm:$0xff] %v38_v9  ;;  %41 = vst [vmem:[#allocation5 + $0x8] sm:$0xff] %v39_v10 }
  0x9c   :  { %96 = shalt.err (!%p93_p12)
}
  0x9d   :  { %s97_s26 = scalar_lea.hbm %s159_s2, 256 }
  0x9e   :  { %p98_p13 = scmp.ne.s32.totalorder %s159_s2, %s97_s26  ;;  %p101_p0 = scmp.lt.u32.totalorder %s97_s26, %s159_s2 }
  0xa0   :  { %p103_p1 = pnand %p101_p0, %p98_p13 }
  0xa2   :  { %106 = shalt.err (!%p103_p1)
}
  0xa3   :  { %51 = dma.vmem_to_hbm [thread:$0]  %s49_s24, 256, %s159_s2, [#allocation4]  }
  0xa4   :  { %109 = dma.done.wait [#allocation4], 256  }
  0xa5   :  { %110 = vsyncadd [#allocation4], 4294967040 }
  0xa6   :  { %55 = vsyncpa [#allocation3], 1 }
  0xa7   :  { %56 = vsyncpa [#allocation4], 1 }

</bundles_post_ra>
